<compile_context>
chip_gen: v7x
topology: tpu7x:2x2x1
jax: 0.10.0
libtpu: 0.0.40
codegen_flags: <defaults>
</compile_context>

<pallas_src>
import jax
import jax.numpy as jnp
from jax.experimental import pallas as pl
from jax.experimental.pallas import tpu as pltpu

# Rescaled-SiLU constant used by GM-NN / alebrew (variance-preserving SiLU).
_SILU_RESCALE = 1.6765324703310907


def _rescaled_silu(x):
    return _SILU_RESCALE * x * jax.nn.sigmoid(x)


def _round_up(x, m):
    return ((x + m - 1) // m) * m


def _chip_budget():
    """Best-effort (vmem_limit_bytes, multi_core) for the local TPU generation.

    v5e / v6e : 128 MiB VMEM, 1 TensorCore -> big scoped limit, no grid split.
    v7x / v4 / v5p / unknown : assume 64 MiB VMEM (v7x) and >=2 TensorCores.
    Mis-detection is only a perf issue (smaller tile / extra step), never a
    correctness issue.
    """
    kind = ""
    try:
        kind = jax.devices()[0].device_kind.lower()
    except Exception:
        pass
    single_tc = any(t in kind for t in ("v5 lite", "v5e", "v6 lite", "v6e"))
    phys = 128 * 1024 * 1024 if single_tc else 64 * 1024 * 1024
    try:  # refine with the hardware query when available
        info = pltpu.get_tpu_info()
        phys = int(getattr(info, "vmem_capacity_bytes", phys)) or phys
    except Exception:
        pass
    limit = min(int(0.75 * phys), 100 * 1024 * 1024)
    return max(limit, 32 * 1024 * 1024), (not single_tc)


def _pick_tile(n, f, h, stream_bytes, pack, vmem_limit, multi_core,
               feature_block_bytes):
    """Atom-tile size: ~feature_block_bytes of streamed features per pipeline
    buffer, capped by the VMEM budget, rounded to the sublane packing, and
    split >=2 ways only on multi-TensorCore parts."""
    tn_bytes = feature_block_bytes // max(1, f * stream_bytes)
    # VMEM ceiling: double-buffered feature/ss/out streams + double-buffered
    # weights/constants + f32 intermediates, with 20% headroom.
    fixed = 2 * (f * h + h * h) * stream_bytes + 2 * 4 * h * 4
    per_atom = 2 * f * stream_bytes + 2 * 2 * 4 + 2 * 4 + 2 * h * 4
    tn_vmem = (int(0.8 * vmem_limit) - fixed) // max(1, per_atom)
    tn = max(pack, min(tn_bytes, tn_vmem))
    tn = min(tn, _round_up(n, pack))              # never larger than problem
    if multi_core and n > pack:                   # >=2 "parallel" grid steps
        tn = min(tn, _round_up(pl.cdiv(n, 2), pack))
    return max(pack, (tn // pack) * pack)


def _mlp_scale_shift_kernel(x_ref, w1_ref, w2_ref, c_ref, ss_ref, o_ref):
    """Fused MLP + AtomicScaleShift for one tile of atoms.

    x_ref  : (TN, F)  per-atom Gaussian-moment features (bf16 or f32)
    w1_ref : (F, H)   LinearLayer 1 weight, pre-scaled by 1/sqrt(F), [in,out]
    w2_ref : (H, H)   LinearLayer 2 weight, pre-scaled by 1/sqrt(H)
    c_ref  : (4, H)   f32 constants: rows [b1; b2; w3*1/sqrt(H); b3 broadcast]
    ss_ref : (TN, 2)  packed per-atom [scale, shift] (AtomicScaleShift), f32
    o_ref  : (TN, 1)  atomic energies (squeezed outside the kernel)
    """
    x = x_ref[...]                                   # streamed dtype (bf16)
    c = c_ref[...]                                   # (4, H) f32
    b1 = c[0:1, :]
    b2 = c[1:2, :]
    w3 = c[2:3, :]
    b3 = c[3:4, 0:1]

    # LinearLayer 1 (NTK scale folded into w1) + RescaledSiLU.
    h = jnp.dot(x, w1_ref[...], preferred_element_type=jnp.float32) + b1
    h = _rescaled_silu(h)                            # f32 (exp on EUP)

    # LinearLayer 2 + RescaledSiLU.
    h = jnp.dot(h.astype(w2_ref.dtype), w2_ref[...],
                preferred_element_type=jnp.float32) + b2
    h = _rescaled_silu(h)

    # Final (H -> 1) layer: VPU multiply + XLU lane reduction (a 1-column
    # matmul would waste the MXU width).
    y = jnp.sum(h * w3, axis=-1, keepdims=True) + b3   # (TN, 1) f32

    # AtomicScaleShift (output_tfms): per-species scale & shift, packed.
    ss = ss_ref[...]
    o_ref[...] = y * ss[:, 0:1] + ss[:, 1:2]


def forward_atomistic_network(features, species, params, *,
                              stream_dtype=jnp.bfloat16,
                              feature_block_bytes=4 * 1024 * 1024):
    """Pallas forward pass.

    features : (N, F) per-atom representation (GaussianMoments output).
               Supplying bf16 directly avoids any wrapper-side cast pass.
    species  : (N,)   int32 atomic species index per atom
    params   : dict with w1 (F,H), b1 (H,), w2 (H,H), b2 (H,), w3 (H,1),
               b3 (1,), scale_params (S,), shift_params (S,)
    returns  : (N,) float32 atomic energies
    """
    n, f = features.shape
    h = params["w1"].shape[1]
    if n == 0:
        return jnp.zeros((0,), jnp.float32)

    stream_bytes = jnp.dtype(stream_dtype).itemsize
    pack = 16 if stream_bytes == 2 else 8       # sublane packing of stream dtype

    vmem_limit, multi_core = _chip_budget()
    tn = _pick_tile(n, f, h, stream_bytes, pack, vmem_limit, multi_core,
                    feature_block_bytes)
    grid = (pl.cdiv(n, tn),)                    # partial last block, no jnp.pad

    # Feature stream: keep caller's bf16 as-is; otherwise cast and ask XLA to
    # fuse the cast into the pallas_call (no extra materialized HBM pass).
    if features.dtype == stream_dtype:
        x = features
        fuse_x = False
    else:
        x = features.astype(stream_dtype)
        fuse_x = True

    inv_sqrt_f = 1.0 / (f ** 0.5)
    inv_sqrt_h = 1.0 / (h ** 0.5)

    # NTK 1/sqrt(fan_in) folded into the weights once (scaled in f32, then cast).
    w1 = (params["w1"].astype(jnp.float32) * inv_sqrt_f).astype(stream_dtype)
    w2 = (params["w2"].astype(jnp.float32) * inv_sqrt_h).astype(stream_dtype)

    # Small f32 constants packed into a single (4, H) operand:
    # rows = [b1 ; b2 ; w3 * 1/sqrt(H) ; b3 broadcast].
    b1 = params["b1"].reshape(1, h).astype(jnp.float32)
    b2 = params["b2"].reshape(1, h).astype(jnp.float32)
    w3 = (params["w3"].reshape(1, h).astype(jnp.float32) * inv_sqrt_h)
    b3 = jnp.full((1, h), params["b3"].astype(jnp.float32).reshape(())[()],
                  dtype=jnp.float32)
    consts = jnp.concatenate([b1, b2, w3, b3], axis=0)

    # Per-atom scale & shift (gather by species in plain JAX), packed into a
    # single (N, 2) array -> one small DMA per tile.
    ss = jnp.stack([params["scale_params"].astype(jnp.float32)[species],
                    params["shift_params"].astype(jnp.float32)[species]],
                   axis=-1)

    full = lambda i: (0, 0)          # broadcast whole (small) weight tensors
    rows = lambda i: (i, 0)          # tile over atoms

    allow_fusion = [fuse_x, False, False, False, False] if fuse_x else None

    out = pl.pallas_call(
        _mlp_scale_shift_kernel,
        out_shape=jax.ShapeDtypeStruct((n, 1), jnp.float32),
        grid_spec=pltpu.PrefetchScalarGridSpec(
            num_scalar_prefetch=0,
            grid=grid,
            in_specs=[
                pl.BlockSpec((tn, f), rows),     # features (streamed)
                pl.BlockSpec((f, h), full),      # w1 (pre-scaled)
                pl.BlockSpec((h, h), full),      # w2 (pre-scaled)
                pl.BlockSpec((4, h), full),      # packed [b1;b2;w3;b3]
                pl.BlockSpec((tn, 2), rows),     # packed [scale, shift]
            ],
            out_specs=pl.BlockSpec((tn, 1), rows),
        ),
        compiler_params=pltpu.CompilerParams(
            dimension_semantics=("parallel",),
            vmem_limit_bytes=vmem_limit,
            allow_input_fusion=allow_fusion,
        ),
    )(x, w1, w2, consts, ss)

    return out[:, 0]   # x.squeeze(-1) -> atomic energies


# ----------------------------------------------------------------------------
# References (pure JAX) for correctness checks.
# ----------------------------------------------------------------------------

def _reference_kernel_numerics(features, species, params,
                               stream_dtype=jnp.bfloat16):
    """Mirrors the kernel's numerics (bf16 streamed operands, folded NTK
    scales, f32 accumulation / activations)."""
    f = features.shape[1]
    h = params["w1"].shape[1]
    x = features.astype(stream_dtype)
    w1 = (params["w1"].astype(jnp.float32) / (f ** 0.5)).astype(stream_dtype)
    w2 = (params["w2"].astype(jnp.float32) / (h ** 0.5)).astype(stream_dtype)
    w3 = params["w3"].reshape(1, h).astype(jnp.float32) / (h ** 0.5)
    z = jnp.dot(x, w1, preferred_element_type=jnp.float32) + params["b1"]
    z = _rescaled_silu(z)
    z = jnp.dot(z.astype(stream_dtype), w2,
                preferred_element_type=jnp.float32) + params["b2"]
    z = _rescaled_silu(z)
    y = jnp.sum(z * w3, axis=-1) + params["b3"][0]
    return y * params["scale_params"][species] + params["shift_params"][species]


def _reference_module(features, species, params):
    """Pure-f32 reference mirroring the PyTorch module semantics."""
    f = features.shape[1]
    h = params["w1"].shape[1]
    z = features @ params["w1"] / (f ** 0.5) + params["b1"]
    z = _rescaled_silu(z)
    z = z @ params["w2"] / (h ** 0.5) + params["b2"]
    z = _rescaled_silu(z)
    y = (z @ params["w3"] / (h ** 0.5) + params["b3"])[:, 0]
    return y * params["scale_params"][species] + params["shift_params"][species]


def make_params(key, n_features, hidden, n_species):
    """Deterministic parameter init (LinearLayer: N(0,1) weights, zero bias;
    AtomicScaleShift: ones, as in build_model with atomic_structures=None)."""
    k1, k2, k3 = jax.random.split(key, 3)
    return {
        "w1": jax.random.normal(k1, (n_features, hidden), jnp.float32),
        "b1": jnp.zeros((hidden,), jnp.float32),
        "w2": jax.random.normal(k2, (hidden, hidden), jnp.float32),
        "b2": jnp.zeros((hidden,), jnp.float32),
        "w3": jax.random.normal(k3, (hidden, 1), jnp.float32),
        "b3": jnp.zeros((1,), jnp.float32),
        "scale_params": jnp.ones((n_species,), jnp.float32),
        "shift_params": jnp.ones((n_species,), jnp.float32),
    }


if __name__ == "__main__":
    N_ATOMS = 100       # deliberately NOT a multiple of the tile (partial block)
    N_FEATURES = 128    # GaussianMoments feature count (representation output)
    HIDDEN = 64         # hidden_sizes = [64, 64]
    N_SPECIES = 4

    key = jax.random.PRNGKey(0)
    kf, ks, kp = jax.random.split(key, 3)

    features = jax.random.normal(kf, (N_ATOMS, N_FEATURES), jnp.float32)
    species = jax.random.randint(ks, (N_ATOMS,), 0, N_SPECIES, jnp.int32)
    params = make_params(kp, N_FEATURES, HIDDEN, N_SPECIES)

    atomic_energies = forward_atomistic_network(features, species, params)
    atomic_energies = jax.block_until_ready(atomic_energies)
    assert atomic_energies.shape == (N_ATOMS,)

    # Path where the caller already supplies bf16 features (no wrapper cast).
    ae_bf16_in = forward_atomistic_network(features.astype(jnp.bfloat16),
                                           species, params)
    ae_bf16_in = jax.block_until_ready(ae_bf16_in)
    assert jnp.allclose(atomic_energies, ae_bf16_in, atol=1e-5, rtol=1e-5), \
        "bf16-input path disagrees with fused-cast path"

    # Tight check vs. a reference mirroring the kernel's bf16 operand streaming.
    ref_k = _reference_kernel_numerics(features, species, params)
    assert jnp.allclose(atomic_energies, ref_k, atol=2e-2, rtol=2e-2), \
        "Pallas kernel disagrees with bf16-streaming reference"

    # Loose check vs. full-f32 module semantics (only bf16 streaming error).
    ref_f32 = _reference_module(features, species, params)
    assert jnp.allclose(atomic_energies, ref_f32, atol=0.15, rtol=0.1), \
        "Pallas kernel deviates too far from f32 module semantics"

    print("KERNEL_OK")
</pallas_src>

<mosaic_0001>
module attributes {stable_mosaic.version = 11 : i64} {
  func.func @_mlp_scale_shift_kernel(%arg0: i32, %arg1: memref<64x128xbf16, #tpu.memory_space<vmem>>, %arg2: memref<128x64xbf16, #tpu.memory_space<vmem>>, %arg3: memref<64x64xbf16, #tpu.memory_space<vmem>>, %arg4: memref<4x64xf32, #tpu.memory_space<vmem>>, %arg5: memref<64x2xf32, #tpu.memory_space<vmem>>, %arg6: memref<64x1xf32, #tpu.memory_space<vmem>>) attributes {dimension_semantics = [#tpu.dimension_semantics<parallel>], iteration_bounds = array<i64: 2>, scalar_prefetch = 0 : i64, scratch_operands = 0 : i64, tpu.core_type = #tpu.core_type<tc>, window_params = [{transform_indices = @transform_0, window_bounds = array<i64: 64, 128>}, {pipeline_mode = #tpu.pipeline_mode<synchronous>, transform_indices = @transform_1, window_bounds = array<i64: 128, 64>}, {pipeline_mode = #tpu.pipeline_mode<synchronous>, transform_indices = @transform_2, window_bounds = array<i64: 64, 64>}, {pipeline_mode = #tpu.pipeline_mode<synchronous>, transform_indices = @transform_3, window_bounds = array<i64: 4, 64>}, {transform_indices = @transform_4, window_bounds = array<i64: 64, 2>}, {transform_indices = @transform_5, window_bounds = array<i64: 64, 1>}]} {
    %c0 = arith.constant 0 : index
    %c0_0 = arith.constant 0 : index
    %0 = vector.load %arg1[%c0, %c0_0] : memref<64x128xbf16, #tpu.memory_space<vmem>>, vector<64x128xbf16>
    %c0_1 = arith.constant 0 : index
    %c0_2 = arith.constant 0 : index
    %1 = vector.load %arg4[%c0_1, %c0_2] : memref<4x64xf32, #tpu.memory_space<vmem>>, vector<4x64xf32>
    %2 = vector.extract_strided_slice %1 {offsets = [0, 0], sizes = [1, 64], strides = [1, 1]} : vector<4x64xf32> to vector<1x64xf32>
    %3 = vector.extract_strided_slice %1 {offsets = [1, 0], sizes = [1, 64], strides = [1, 1]} : vector<4x64xf32> to vector<1x64xf32>
    %4 = vector.extract_strided_slice %1 {offsets = [2, 0], sizes = [1, 64], strides = [1, 1]} : vector<4x64xf32> to vector<1x64xf32>
    %5 = vector.extract_strided_slice %1 {offsets = [3, 0], sizes = [1, 1], strides = [1, 1]} : vector<4x64xf32> to vector<1x1xf32>
    %c0_3 = arith.constant 0 : index
    %c0_4 = arith.constant 0 : index
    %6 = vector.load %arg2[%c0_3, %c0_4] : memref<128x64xbf16, #tpu.memory_space<vmem>>, vector<128x64xbf16>
    %cst = arith.constant dense<0.000000e+00> : vector<64x64xf32>
    %7 = tpu.matmul %0, %6, %cst {dimension_numbers = #tpu.dot_dimension_numbers<[1], [0], [0], [1], [0, 0, 1, 1], [], []>} : vector<64x128xbf16>, vector<128x64xbf16>, vector<64x64xf32> -> vector<64x64xf32>
    %8 = vector.broadcast %2 : vector<1x64xf32> to vector<64x64xf32>
    %9 = arith.addf %7, %8 : vector<64x64xf32>
    %cst_5 = arith.constant 1.67653251 : f32
    %10 = vector.broadcast %cst_5 : f32 to vector<64x64xf32>
    %11 = arith.mulf %10, %9 : vector<64x64xf32>
    %12 = arith.negf %9 : vector<64x64xf32>
    %13 = math.exp %12 : vector<64x64xf32>
    %cst_6 = arith.constant 1.000000e+00 : f32
    %14 = vector.broadcast %cst_6 : f32 to vector<64x64xf32>
    %15 = arith.addf %14, %13 : vector<64x64xf32>
    %16 = arith.divf %14, %15 : vector<64x64xf32>
    %17 = arith.mulf %11, %16 : vector<64x64xf32>
    %18 = arith.truncf %17 : vector<64x64xf32> to vector<64x64xbf16>
    %c0_7 = arith.constant 0 : index
    %c0_8 = arith.constant 0 : index
    %19 = vector.load %arg3[%c0_7, %c0_8] : memref<64x64xbf16, #tpu.memory_space<vmem>>, vector<64x64xbf16>
    %cst_9 = arith.constant dense<0.000000e+00> : vector<64x64xf32>
    %20 = tpu.matmul %18, %19, %cst_9 {dimension_numbers = #tpu.dot_dimension_numbers<[1], [0], [0], [1], [0, 0, 1, 1], [], []>} : vector<64x64xbf16>, vector<64x64xbf16>, vector<64x64xf32> -> vector<64x64xf32>
    %21 = vector.broadcast %3 : vector<1x64xf32> to vector<64x64xf32>
    %22 = arith.addf %20, %21 : vector<64x64xf32>
    %cst_10 = arith.constant 1.67653251 : f32
    %23 = vector.broadcast %cst_10 : f32 to vector<64x64xf32>
    %24 = arith.mulf %23, %22 : vector<64x64xf32>
    %25 = arith.negf %22 : vector<64x64xf32>
    %26 = math.exp %25 : vector<64x64xf32>
    %cst_11 = arith.constant 1.000000e+00 : f32
    %27 = vector.broadcast %cst_11 : f32 to vector<64x64xf32>
    %28 = arith.addf %27, %26 : vector<64x64xf32>
    %29 = arith.divf %27, %28 : vector<64x64xf32>
    %30 = arith.mulf %24, %29 : vector<64x64xf32>
    %31 = vector.broadcast %4 : vector<1x64xf32> to vector<64x64xf32>
    %32 = arith.mulf %30, %31 : vector<64x64xf32>
    %cst_12 = arith.constant dense<0.000000e+00> : vector<64xf32>
    %33 = vector.multi_reduction <add>, %32, %cst_12 [1] : vector<64x64xf32> to vector<64xf32>
    %34 = vector.shape_cast %33 : vector<64xf32> to vector<64x1xf32>
    %35 = vector.broadcast %5 : vector<1x1xf32> to vector<64x1xf32>
    %36 = arith.addf %34, %35 : vector<64x1xf32>
    %c0_13 = arith.constant 0 : index
    %c0_14 = arith.constant 0 : index
    %37 = vector.load %arg5[%c0_13, %c0_14] : memref<64x2xf32, #tpu.memory_space<vmem>>, vector<64x2xf32>
    %38 = vector.extract_strided_slice %37 {offsets = [0, 0], sizes = [64, 1], strides = [1, 1]} : vector<64x2xf32> to vector<64x1xf32>
    %39 = arith.mulf %36, %38 : vector<64x1xf32>
    %40 = vector.extract_strided_slice %37 {offsets = [0, 1], sizes = [64, 1], strides = [1, 1]} : vector<64x2xf32> to vector<64x1xf32>
    %41 = arith.addf %39, %40 : vector<64x1xf32>
    %c0_15 = arith.constant 0 : index
    %c0_16 = arith.constant 0 : index
    %42 = vector.load %arg6[%c0_15, %c0_16] : memref<64x1xf32, #tpu.memory_space<vmem>>, vector<64x1xf32>
    tpu.vector_store %arg6[%c0_15, %c0_16], %41 {strides = array<i32>} : memref<64x1xf32, #tpu.memory_space<vmem>>, vector<64x1xf32>,
    return
  }
  func.func @transform_0(%arg0: i32) -> (i32, i32) {
    %c0_i32 = arith.constant 0 : i32
    %c0_i32_0 = arith.constant 0 : i32
    return %arg0, %c0_i32 : i32, i32
  }
  func.func @transform_1(%arg0: i32) -> (i32, i32) {
    %c0_i32 = arith.constant 0 : i32
    %c0_i32_0 = arith.constant 0 : i32
    %c0_i32_1 = arith.constant 0 : i32
    return %c0_i32, %c0_i32_0 : i32, i32
  }
  func.func @transform_2(%arg0: i32) -> (i32, i32) {
    %c0_i32 = arith.constant 0 : i32
    %c0_i32_0 = arith.constant 0 : i32
    %c0_i32_1 = arith.constant 0 : i32
    return %c0_i32, %c0_i32_0 : i32, i32
  }
  func.func @transform_3(%arg0: i32) -> (i32, i32) {
    %c0_i32 = arith.constant 0 : i32
    %c0_i32_0 = arith.constant 0 : i32
    %c0_i32_1 = arith.constant 0 : i32
    return %c0_i32, %c0_i32_0 : i32, i32
  }
  func.func @transform_4(%arg0: i32) -> (i32, i32) {
    %c0_i32 = arith.constant 0 : i32
    %c0_i32_0 = arith.constant 0 : i32
    return %arg0, %c0_i32 : i32, i32
  }
  func.func @transform_5(%arg0: i32) -> (i32, i32) {
    %c0_i32 = arith.constant 0 : i32
    %c0_i32_0 = arith.constant 0 : i32
    return %arg0, %c0_i32 : i32, i32
  }
}

</mosaic_0001>

<bundles_post_ra>
// kernel: tpu_custom_call.1
= control target key start
LH: loop header
LB: loop body
LE: loop exit
PB: predicated region body
PF: predicated region fallthrough
CT: control target
= control target key end

     0   :  { %s1482_s18 = smov 0   ;;  %s1484_s19 = smov 0   ;;  %s1711_s0 = inlined_call_operand.vmem [shape: bf16[100,128], index: 0, kind: input, shape index: {}]   ;;  %s1712_s1 = inlined_call_operand.vmem [shape: bf16[128,64], index: 1, kind: input, shape index: {}]   ;;  %s1713_s2 = inlined_call_operand.vmem [shape: bf16[64,64], index: 2, kind: input, shape index: {}]   ;;  %s1714_s3 = inlined_call_operand.vmem [shape: f32[4,64], index: 3, kind: input, shape index: {}]   ;;  %s1715_s4 = inlined_call_operand.vmem [shape: f32[100,2], index: 4, kind: input, shape index: {}]   ;;  %s1716_s5 = inlined_call_operand.vmem [shape: f32[100,1], index: 5, kind: output, shape index: {}]  }
   0x1   :  { %s1486_s20 = smov 0  }
   0x2 LB: > { %s1495_s21 = sadd.s32 4294967295, %s1417_s20   ;;  %s1497_s22 = sadd.s32 1, %s1417_s20   ;;  %s1417_s20 = sphi %s1486_s20, %s1723_s20   ;;  %s1413_s19 = sphi %s1484_s19, %s1722_s19   ;;  %s1409_s18 = sphi %s1482_s18, %s1721_s18  }
   0x3   : > { %s134_s23 = ssub.s32 %s1417_s20, %s1497_s22  ;;  %s137_s24 = sadd.s32 1, %s1413_s19 }
   0x4   : > { %p135_p0 = scmp.eq.s32.totalorder %s134_s23, 0  ;;  %p147_p1 = scmp.ne.s32.totalorder %s1413_s19, %s1409_s18 }
   0x5   : > { %p148_p2 = scmp.eq.s32.totalorder %s1495_s21, 1  ;;  %p1072_p3 = scmp.ge.s32.totalorder %s1417_s20, 1 }
   0x6   : > { %s1505_s25 = scalar_select %p135_p0, %s1413_s19, %s137_s24  }
   0x7   : > { %p1507_p4 = por %p148_p2, %p147_p1  ;;  %p215_p5 = scmp.lt.s32.totalorder %s1417_s20, 3 }
   0x9   : > { %p216_p6 = pnand %p1072_p3, %p215_p5 }
   0xa   : > { %v1283_v0 = vld [vmem:[%s1712_s1] sm:$0xff] (!%p216_p6)   ;;  %s1515_s29 = sshll.u32 (!%p216_p6), %s1495_s21, 3  ;;  %v1284_v1 = vld [vmem:[%s1712_s1 + $0x8] sm:$0xff] (!%p216_p6)   ;;  %v1285_v2 = vld [vmem:[%s1712_s1 + $0x10] sm:$0xff] (!%p216_p6)   ;;  %s1451_s23 = smov (!%p216_p6), 127   ;;  %v314_v21 = vlaneseq (!%p216_p6)  ;;  %vm559_vm0 = vcmask (!%p216_p6), 523264  }
   0xb   : > { %219 = sbr.rel (%p216_p6) target bundleno = 748 (0x2ec), region = 40  ;;  %p260_p7 = scmp.lt.s32.totalorder (!%p216_p6), %s1515_s29, 12  ;;  %1154 = vmatprep.subr.bf16.mxu0 (!%p216_p6), %v1283_v0  ;;  %v1286_v3 = vld [vmem:[%s1712_s1 + $0x18] sm:$0xff] (!%p216_p6)   ;;  %v1287_v5 = vld [vmem:[%s1712_s1 + $0x20] sm:$0xff] (!%p216_p6)   ;;  %v1288_v6 = vld [vmem:[%s1712_s1 + $0x28] sm:$0xff] (!%p216_p6)   ;;  %vm805_vm1 = vcmask (!%p216_p6), 7168  }
   0xc   : > { %1155 = vmatpush3.bf16.msra.mxu0 (!%p216_p6), %v1283_v0  ;;  %v1289_v7 = vld [vmem:[%s1712_s1 + $0x30] sm:$0xff] (!%p216_p6)   ;;  %v1290_v8 = vld [vmem:[%s1712_s1 + $0x38] sm:$0xff] (!%p216_p6)   ;;  %v1295_v12 = vld [vmem:[%s1713_s2] sm:$0xff] (!%p216_p6)   ;;  %v1589_v22 = vshrl.u32 (!%p216_p6), %v314_v21, 7  ;;  %s252_s27 = sand.u32 (!%p216_p6), 1, %s1409_s18  }
   0xd   : > { %1156 = vmatprep.subr.bf16.mxu0 (!%p216_p6), %v1284_v1  ;;  %1178 = vmatprep.subr.bf16.mxu1 (!%p216_p6), %v1295_v12  ;;  %v1296_v13 = vld [vmem:[%s1713_s2 + $0x8] sm:$0xff] (!%p216_p6)   ;;  %v1297_v14 = vld [vmem:[%s1713_s2 + $0x10] sm:$0xff] (!%p216_p6)   ;;  %v1298_v15 = vld [vmem:[%s1713_s2 + $0x18] sm:$0xff] (!%p216_p6)   ;;  %s1073_s28 = sshll.u32 (!%p216_p6), %s252_s27, 6 }
   0xe   : > { %1179 = vmatpush3.bf16.msra.mxu1 (!%p216_p6), %v1295_v12  ;;  %v316_v23 = vsub.s32 (!%p216_p6), 0, %v1589_v22  ;;  %v1595_v24 = vld [vmem:[%s1714_s3] sm:$0xf] (!%p216_p6)  ;;  %s1628_s30 = scalar_lea.vmem (!%p216_p6), [#allocation2], %s1073_s28  }
   0xf   : > { %1180 = vmatprep.subr.bf16.mxu1 (!%p216_p6), %v1296_v13 }
  0x10   : > { %1157 = vmatpush3.bf16.msra.mxu0 (!%p216_p6), %v1284_v1  ;;  %v317_v25 = vrot.slane (!%p216_p6), %v1595_v24, %v316_v23 }
  0x11   : > { %1158 = vmatprep.subr.bf16.mxu0 (!%p216_p6), %v1285_v2 }
  0x12   : > { %s1522_s7 = scalar_select %p260_p7, %s1515_s29, 12  ;;  %1181 = vmatpush3.bf16.msra.mxu1 %v1296_v13 }
  0x13   : > { %1182 = vmatprep.subr.bf16.mxu1 %v1297_v14  ;;  %s822_s18 = ssub.s32 (%p1507_p4), 13, %s1515_s29  ;;  %s1131_s6 = sshll.u32 (%p1507_p4), %s1495_s21, 6 }
  0x14   : > { %s1075_s10 = sshll.u32 %s1522_s7, 2  ;;  %1159 = vmatpush3.bf16.msra.mxu0 %v1285_v2  ;;  %s1077_s15 = sshll.u32 %s1522_s7, 3 }
  0x15   : > { %s263_s13 = scalar_lea.vmem %s1711_s0, %s1075_s10  ;;  %1160 = vmatprep.subr.bf16.mxu0 %v1286_v3  ;;  %s1562_s20 = scalar_lea.vmem %s1715_s4, %s1077_s15 }
  0x16   : > { %v1291_v4 = vld [vmem:[%s263_s13] sm:$0xff]   ;;  %v1292_v9 = vld [vmem:[%s263_s13 + $0x8] sm:$0xff]   ;;  %v1293_v10 = vld [vmem:[%s263_s13 + $0x10] sm:$0xff]   ;;  %1183 = vmatpush3.bf16.msra.mxu1 %v1297_v14  ;;  %p823_p8 = scmp.lt.s32.totalorder (%p1507_p4), %s822_s18, 8  ;;  %s1657_s10 = scalar_lea.vmem (%p1507_p4), %s1716_s5, %s1131_s6  }
  0x17   : > { %1170 = vmatprep.mubr.bf16.mxu0 %v1291_v4  ;;  %v1294_v11 = vld [vmem:[%s263_s13 + $0x18] sm:$0xff]   ;;  %1184 = vmatprep.subr.bf16.mxu1 %v1298_v15  ;;  %v1565_v16 = vld [vmem:[%s1562_s20 + $0x8] sm:$0xff]  ;;  %v1570_v17 = vld [vmem:[%s1562_s20] sm:$0xff] }
  0x18   : > { %1161 = vmatpush3.bf16.msra.mxu0 %v1286_v3  ;;  %775 = vrot.lane.b32.xlu1 %v1565_v16, %s1451_s23  ;;  %v1573_v18 = vld [vmem:[%s1562_s20 + $0x10] sm:$0xff]  ;;  %v1580_v19 = vld [vmem:[%s1562_s20 + $0x18] sm:$0xff]  ;;  %v1585_v20 = vld [vmem:[%s1562_s20 + $0x28] sm:$0xff] }
  0x19   : > { %1162 = vmatprep.subr.bf16.mxu0 %v1287_v5  ;;  %773 = vrot.lane.b32.xlu0 %v1570_v17, %s1451_s23 }
  0x1a   : > { %1185 = vmatpush3.bf16.msra.mxu1 %v1298_v15 }
  0x1c   : > { %1163 = vmatpush3.bf16.msra.mxu0 %v1287_v5  ;;  %777 = vrot.lane.b32.xlu1 %v1573_v18, %s1451_s23 }
  0x1d   : > { %1164 = vmatprep.subr.bf16.mxu0 %v1288_v6 }
  0x20   : > { %1165 = vmatpush3.bf16.msra.mxu0 %v1288_v6  ;;  %779 = vrot.lane.b32.xlu1 %v1580_v19, %s1451_s23 }
  0x21   : > { %1166 = vmatprep.subr.bf16.mxu0 %v1289_v7 }
  0x24   : > { %1167 = vmatpush3.bf16.msra.mxu0 %v1289_v7  ;;  %783 = vrot.lane.b32.xlu1 %v1585_v20, %s1451_s23 }
  0x25   : > { %1168 = vmatprep.subr.bf16.mxu0 %v1290_v8 }
  0x28   : > { %1169 = vmatpush3.bf16.msra.mxu0 %v1290_v8 }
  0x2b   : > { %1171 = vmatmul.mubr.bf16.vlgmr.msra.gmra.mrb[0].mxu0 %v1292_v9 }
  0x2c   : > { %1174 = vmatprep.mubr.bf16.mxu0 %v1293_v10 }
  0x33   : > { %1175 = vmatmul.mubr.bf16.gmra.mrb[4].mxu0 %v1294_v11 }
  0xfe   : > { %v1172_v26 = vpop.f32.mrb[0].mxu0 }
  0xff   : > { %v433_v27 = vadd.f32 %v1172_v26, %v317_v25  ;;  %v424_v28 = vpop.f32.mrb[1].mxu0 }
 0x100   : > { %v425_v29 = vadd.f32 %v424_v28, %v317_v25  ;;  %v1173_v30 = vpop.f32.mrb[2].mxu0 }
 0x101   : > { %v1092_v31 = vmul.f32 -1.442695, %v433_v27  ;;  %v436_v32 = vadd.f32 %v1173_v30, %v317_v25  ;;  %v427_v33 = vpop.f32.mrb[3].mxu0  ;;  %v457_v4 = vmul.f32 1.6765325, %v433_v27 }
 0x102   : > { %v1090_v34 = vmul.f32 -1.442695, %v425_v29  ;;  %v428_v35 = vadd.f32 %v427_v33, %v317_v25  ;;  %v455_v7 = vmul.f32 1.6765325, %v425_v29 }
 0x103   : > { %1299 = vpow2.f32 %v1092_v31  ;;  %v1093_v36 = vmul.f32 -1.442695, %v436_v32  ;;  %v458_v5 = vmul.f32 1.6765325, %v436_v32 }
 0x104   : > { %1301 = vpow2.f32 %v1090_v34  ;;  %v1091_v37 = vmul.f32 -1.442695, %v428_v35  ;;  %v456_v8 = vmul.f32 1.6765325, %v428_v35 }
 0x105   : > { %1303 = vpow2.f32 %v1093_v36 }
 0x106   : > { %1305 = vpow2.f32 %v1091_v37  ;;  %v1176_v38 = vpop.f32.mrb[4].mxu0  ;;  %v1603_v37 = vld [vmem:[%s1562_s20 + $0x20] sm:$0xff] }
 0x107   : > { %v449_v39 = vadd.f32 %v1176_v38, %v317_v25  ;;  %v440_v40 = vpop.f32.mrb[5].mxu0  ;;  %781 = vrot.lane.b32.xlu0 %v1603_v37, %s1451_s23  ;;  %v533_v38 = vsub.s32 1, %v1589_v22 }
 0x108   : > { %v441_v41 = vadd.f32 %v440_v40, %v317_v25  ;;  %v1177_v42 = vpop.f32.mrb[6].mxu0 }
 0x109   : > { %v1096_v43 = vmul.f32 -1.442695, %v449_v39  ;;  %v452_v44 = vadd.f32 %v1177_v42, %v317_v25  ;;  %v443_v45 = vpop.f32.mrb[7].mxu0 }
 0x10a   : > { %v1094_v46 = vmul.f32 -1.442695, %v441_v41  ;;  %v444_v47 = vadd.f32 %v443_v45, %v317_v25  ;;  %v461_v25 = vmul.f32 1.6765325, %v449_v39  ;;  %v459_v28 = vmul.f32 1.6765325, %v441_v41 }
 0x10b   : > { %1307 = vpow2.f32 %v1096_v43  ;;  %v1097_v48 = vmul.f32 -1.442695, %v452_v44  ;;  %v462_v26 = vmul.f32 1.6765325, %v452_v44  ;;  %v534_v39 = vrot.slane %v1595_v24, %v533_v38 }
 0x10c   : > { %1309 = vpow2.f32 %v1094_v46  ;;  %v1095_v49 = vmul.f32 -1.442695, %v444_v47  ;;  %v460_v29 = vmul.f32 1.6765325, %v444_v47 }
 0x10d   : > { %v1300_v50 = vpop.eup %1299  ;;  %1311 = vpow2.f32 %v1097_v48 }
 0x10e   : > { %v1302_v51 = vpop.eup %1301  ;;  %v489_v52 = vadd.f32 1.0, %v1300_v50  ;;  %1313 = vpow2.f32 %v1095_v49 }
 0x10f   : > { %v1304_v53 = vpop.eup %1303  ;;  %v487_v54 = vadd.f32 1.0, %v1302_v51 }
 0x110   : > { %v1306_v55 = vpop.eup %1305  ;;  %1315 = vrcp.f32 %v489_v52  ;;  %v490_v56 = vadd.f32 1.0, %v1304_v53 }
 0x111   : > { %1317 = vrcp.f32 %v487_v54  ;;  %v488_v57 = vadd.f32 1.0, %v1306_v55 }
 0x112   : > { %1319 = vrcp.f32 %v490_v56 }
 0x113   : > { %1321 = vrcp.f32 %v488_v57 }
 0x115   : > { %v1308_v58 = vpop.eup %1307 }
 0x116   : > { %v1310_v59 = vpop.eup %1309  ;;  %v493_v60 = vadd.f32 1.0, %v1308_v58 }
 0x117   : > { %v1312_v61 = vpop.eup %1311  ;;  %v491_v62 = vadd.f32 1.0, %v1310_v59 }
 0x118   : > { %v1314_v63 = vpop.eup %1313  ;;  %1323 = vrcp.f32 %v493_v60  ;;  %v494_v0 = vadd.f32 1.0, %v1312_v61 }
 0x119   : > { %1325 = vrcp.f32 %v491_v62  ;;  %v492_v1 = vadd.f32 1.0, %v1314_v63 }
 0x11a   : > { %v1316_v2 = vpop.eup %1315  ;;  %1327 = vrcp.f32 %v494_v0 }
 0x11b   : > { %v1318_v3 = vpop.eup %1317  ;;  %1329 = vrcp.f32 %v492_v1  ;;  %v513_v10 = vmul.f32 %v1316_v2, %v457_v4 }
 0x11c   : > { %v1320_v6 = vpop.eup %1319  ;;  %v511_v12 = vmul.f32 %v1318_v3, %v455_v7 }
 0x11d   : > { %v1322_v9 = vpop.eup %1321  ;;  %v514_v11 = vmul.f32 %v1320_v6, %v458_v5 }
 0x11e   : > { %v512_v13 = vmul.f32 %v1322_v9, %v456_v8  ;;  %v703_v9 = vsub.s32 2, %v1589_v22 }
 0x11f   : > { %v520_v14 = vpack.c.bf16 %v514_v11, %v513_v10 }
 0x120   : > { %v519_v15 = vpack.c.bf16 %v512_v13, %v511_v12 }
 0x122   : > { %v1324_v21 = vpop.eup %1323  ;;  %1186 = vmatprep.mubr.msk.bf16.mxu1 %vm559_vm0, %v519_v15 }
 0x123   : > { %v1326_v23 = vpop.eup %1325  ;;  %1187 = vmatmul.mubr.msk.bf16.vlgmr.msra.gmra.mrb[0].mxu1 %vm559_vm0, %v520_v14  ;;  %v517_v31 = vmul.f32 %v1324_v21, %v461_v25  ;;  %v704_v25 = vrot.slane %v1595_v24, %v703_v9 }
 0x124   : > { %v1328_v27 = vpop.eup %1327  ;;  %v515_v33 = vmul.f32 %v1326_v23, %v459_v28 }
 0x125   : > { %v1330_v30 = vpop.eup %1329  ;;  %v518_v32 = vmul.f32 %v1328_v27, %v462_v26 }
 0x126   : > { %v516_v34 = vmul.f32 %v1330_v30, %v460_v29 }
 0x127   : > { %v522_v35 = vpack.c.bf16 %v518_v32, %v517_v31 }
 0x128   : > { %v521_v36 = vpack.c.bf16 %v516_v34, %v515_v33 }
 0x12a   : > { %1190 = vmatprep.mubr.msk.bf16.mxu1 %vm559_vm0, %v521_v36 }
 0x12b   : > { %1191 = vmatmul.mubr.msk.bf16.gmra.mrb[4].mxu1 %vm559_vm0, %v522_v35 }
 0x1f6   : > { %v1188_v40 = vpop.f32.mrb[0].mxu1 }
 0x1f7   : > { %v615_v41 = vadd.f32 %v1188_v40, %v534_v39  ;;  %v606_v42 = vpop.f32.mrb[1].mxu1 }
 0x1f8   : > { %v607_v43 = vadd.f32 %v606_v42, %v534_v39  ;;  %v1189_v44 = vpop.f32.mrb[2].mxu1 }
 0x1f9   : > { %v1108_v45 = vmul.f32 -1.442695, %v615_v41  ;;  %v618_v46 = vadd.f32 %v1189_v44, %v534_v39  ;;  %v609_v47 = vpop.f32.mrb[3].mxu1  ;;  %v639_v21 = vmul.f32 1.6765325, %v615_v41 }
 0x1fa   : > { %v1106_v48 = vmul.f32 -1.442695, %v607_v43  ;;  %v610_v49 = vadd.f32 %v609_v47, %v534_v39  ;;  %v637_v27 = vmul.f32 1.6765325, %v607_v43 }
 0x1fb   : > { %1331 = vpow2.f32 %v1108_v45  ;;  %v1109_v50 = vmul.f32 -1.442695, %v618_v46  ;;  %v640_v29 = vmul.f32 1.6765325, %v618_v46 }
 0x1fc   : > { %1333 = vpow2.f32 %v1106_v48  ;;  %v1107_v51 = vmul.f32 -1.442695, %v610_v49  ;;  %v638_v32 = vmul.f32 1.6765325, %v610_v49 }
 0x1fd   : > { %1335 = vpow2.f32 %v1109_v50 }
 0x1fe   : > { %1337 = vpow2.f32 %v1107_v51  ;;  %v1192_v52 = vpop.f32.mrb[4].mxu1 }
 0x1ff   : > { %v631_v53 = vadd.f32 %v1192_v52, %v534_v39  ;;  %v622_v54 = vpop.f32.mrb[5].mxu1 }
 0x200   : > { %v623_v55 = vadd.f32 %v622_v54, %v534_v39  ;;  %v1193_v56 = vpop.f32.mrb[6].mxu1 }
 0x201   : > { %v1112_v57 = vmul.f32 -1.442695, %v631_v53  ;;  %v634_v58 = vadd.f32 %v1193_v56, %v534_v39  ;;  %v625_v59 = vpop.f32.mrb[7].mxu1  ;;  %v643_v44 = vmul.f32 1.6765325, %v631_v53 }
 0x202   : > { %v1110_v60 = vmul.f32 -1.442695, %v623_v55  ;;  %v626_v61 = vadd.f32 %v625_v59, %v534_v39  ;;  %v641_v46 = vmul.f32 1.6765325, %v623_v55 }
 0x203   : > { %1339 = vpow2.f32 %v1112_v57  ;;  %v1113_v62 = vmul.f32 -1.442695, %v634_v58  ;;  %v644_v48 = vmul.f32 1.6765325, %v634_v58 }
 0x204   : > { %1341 = vpow2.f32 %v1110_v60  ;;  %v1111_v63 = vmul.f32 -1.442695, %v626_v61  ;;  %v642_v52 = vmul.f32 1.6765325, %v626_v61 }
 0x205   : > { %v1332_v0 = vpop.eup %1331  ;;  %1343 = vpow2.f32 %v1113_v62 }
 0x206   : > { %v1334_v1 = vpop.eup %1333  ;;  %v671_v2 = vadd.f32 1.0, %v1332_v0  ;;  %1345 = vpow2.f32 %v1111_v63 }
 0x207   : > { %v1336_v3 = vpop.eup %1335  ;;  %v669_v4 = vadd.f32 1.0, %v1334_v1 }
 0x208   : > { %v1338_v5 = vpop.eup %1337  ;;  %1347 = vrcp.f32 %v671_v2  ;;  %v672_v6 = vadd.f32 1.0, %v1336_v3  ;;  %v756_v2 = vld [vmem:[%s1562_s20 + $0x38] sm:$0xff]  ;;  %v755_v3 = vld [vmem:[%s1562_s20 + $0x30] sm:$0xff] }
 0x209   : > { %1349 = vrcp.f32 %v669_v4  ;;  %v670_v7 = vadd.f32 1.0, %v1338_v5  ;;  %v776_v4 = vpop.permute.xlu1 %775 }
 0x20a   : > { %1351 = vrcp.f32 %v672_v6 }
 0x20b   : > { %1353 = vrcp.f32 %v670_v7  ;;  %v774_v7 = vpop.permute.xlu0 %773 }
 0x20d   : > { %v1340_v8 = vpop.eup %1339  ;;  %v778_v5 = vpop.permute.xlu1 %777 }
 0x20e   : > { %v1342_v10 = vpop.eup %1341  ;;  %v675_v11 = vadd.f32 1.0, %v1340_v8  ;;  %v739_v8 = vsub.s32 3, %v1589_v22 }
 0x20f   : > { %v1344_v12 = vpop.eup %1343  ;;  %v673_v13 = vadd.f32 1.0, %v1342_v10  ;;  %v782_v10 = vpop.permute.xlu0 %781 }
 0x210   : > { %v1346_v14 = vpop.eup %1345  ;;  %1355 = vrcp.f32 %v675_v11  ;;  %v676_v15 = vadd.f32 1.0, %v1344_v12  ;;  %v740_v11 = vrot.slane %v1595_v24, %v739_v8 }
 0x211   : > { %1357 = vrcp.f32 %v673_v13  ;;  %v674_v23 = vadd.f32 1.0, %v1346_v14  ;;  %v780_v6 = vpop.permute.xlu1 %779 }
 0x212   : > { %v1348_v26 = vpop.eup %1347  ;;  %1359 = vrcp.f32 %v676_v15 }
 0x213   : > { %v1350_v28 = vpop.eup %1349  ;;  %1361 = vrcp.f32 %v674_v23  ;;  %v695_v30 = vmul.f32 %v1348_v26, %v639_v21 }
 0x214   : > { %v1352_v31 = vpop.eup %1351  ;;  %v693_v33 = vmul.f32 %v1350_v28, %v637_v27 }
 0x215   : > { %v1354_v34 = vpop.eup %1353  ;;  %v707_v35 = vmul.f32 %v704_v25, %v695_v30  ;;  %v696_v36 = vmul.f32 %v1352_v31, %v640_v29  ;;  %v784_v9 = vpop.permute.xlu1 %783 }
 0x216   : > { %v705_v38 = vmul.f32 %v704_v25, %v693_v33  ;;  %v694_v39 = vmul.f32 %v1354_v34, %v638_v32 }
 0x217   : > { %v719_v40 = vsel %vm559_vm0, %v707_v35, 0.0  ;;  %v708_v41 = vmul.f32 %v704_v25, %v696_v36 }
 0x218   : > { %720 = vadd.xlane.f32.xlu1 %v719_v40  ;;  %v713_v42 = vsel %vm559_vm0, %v705_v38, 0.0  ;;  %v706_v43 = vmul.f32 %v704_v25, %v694_v39 }
 0x219   : > { %714 = vadd.xlane.f32.xlu0 %v713_v42  ;;  %v722_v49 = vsel %vm559_vm0, %v708_v41, 0.0 }
 0x21a   : > { %v1356_v45 = vpop.eup %1355  ;;  %v716_v54 = vsel %vm559_vm0, %v706_v43, 0.0 }
 0x21b   : > { %v1358_v47 = vpop.eup %1357  ;;  %v699_v50 = vmul.f32 %v1356_v45, %v643_v44 }
 0x21c   : > { %v1360_v51 = vpop.eup %1359  ;;  %723 = vadd.xlane.f32.xlu1 %v722_v49  ;;  %v697_v56 = vmul.f32 %v1358_v47, %v641_v46 }
 0x21d   : > { %v1362_v57 = vpop.eup %1361  ;;  %717 = vadd.xlane.f32.xlu0 %v716_v54  ;;  %v711_v59 = vmul.f32 %v704_v25, %v699_v50  ;;  %v700_v53 = vmul.f32 %v1360_v51, %v644_v48 }
 0x21e   : > { %v698_v60 = vmul.f32 %v1362_v57, %v642_v52  ;;  %v709_v58 = vmul.f32 %v704_v25, %v697_v56 }
 0x21f   : > { %v731_v55 = vsel %vm559_vm0, %v711_v59, 0.0  ;;  %v712_v62 = vmul.f32 %v704_v25, %v700_v53 }
 0x220   : > { %v710_v0 = vmul.f32 %v704_v25, %v698_v60  ;;  %v725_v61 = vsel %vm559_vm0, %v709_v58, 0.0 }
 0x221   : > { %732 = vadd.xlane.f32.xlu0 %v731_v55  ;;  %v734_v63 = vsel %vm559_vm0, %v712_v62, 0.0 }
 0x222   : > { %735 = vadd.xlane.f32.xlu1 %v734_v63  ;;  %v728_v1 = vsel %vm559_vm0, %v710_v0, 0.0 }
 0x225   : > { %726 = vadd.xlane.f32.xlu0 %v725_v61 }
 0x226   : > { %729 = vadd.xlane.f32.xlu1 %v728_v1 }
 0x237   : > { %787 = vrot.lane.b32.xlu1 %v756_v2, %s1451_s23 }
 0x23b   : > { %785 = vrot.lane.b32.xlu0 %v755_v3, %s1451_s23 }
 0x2a5   : > { %v721_v12 = vpop.xlane.xlu1 %720 }
 0x2a6   : > { %v743_v13 = vadd.f32 %v740_v11, %v721_v12  ;;  %v715_v14 = vpop.xlane.xlu0 %714 }
 0x2a7   : > { %v741_v15 = vadd.f32 %v740_v11, %v715_v14 }
 0x2a8   : > { %v759_v21 = vmul.f32 %v1573_v18, %v743_v13 }
 0x2a9   : > { %v757_v23 = vmul.f32 %v1570_v17, %v741_v15  ;;  %v724_v25 = vpop.xlane.xlu1 %723 }
 0x2aa   : > { %v799_v26 = vadd.f32 %v778_v5, %v759_v21  ;;  %v744_v27 = vadd.f32 %v740_v11, %v724_v25  ;;  %v718_v28 = vpop.xlane.xlu0 %717 }
 0x2ab   : > { %v797_v22 = vadd.f32 %v774_v7, %v757_v23  ;;  %v742_v29 = vadd.f32 %v740_v11, %v718_v28 }
 0x2ac   : > { %808 = vst.msk [vmem:[%s1628_s30 + $0x10] sm:$0xff] %vm805_vm1, %v799_v26  ;;  %v760_v24 = vmul.f32 %v1580_v19, %v744_v27 }
 0x2ad   : > { %806 = vst.msk [vmem:[%s1628_s30] sm:$0xff] %vm805_vm1, %v797_v22  ;;  %v758_v17 = vmul.f32 %v1565_v16, %v742_v29 }
 0x2ae   : > { %v800_v18 = vadd.f32 %v780_v6, %v760_v24  ;;  %v733_v30 = vpop.xlane.xlu0 %732 }
 0x2af   : > { %v798_v31 = vadd.f32 %v776_v4, %v758_v17  ;;  %v736_v32 = vpop.xlane.xlu1 %735  ;;  %v747_v33 = vadd.f32 %v740_v11, %v733_v30 }
 0x2b0   : > { %809 = vst.msk [vmem:[%s1628_s30 + $0x18] sm:$0xff] %vm805_vm1, %v800_v18  ;;  %v748_v34 = vadd.f32 %v740_v11, %v736_v32 }
 0x2b1   : > { %807 = vst.msk [vmem:[%s1628_s30 + $0x8] sm:$0xff] %vm805_vm1, %v798_v31  ;;  %v763_v39 = vmul.f32 %v755_v3, %v747_v33 }
 0x2b2   : > { %v727_v35 = vpop.xlane.xlu0 %726  ;;  %v764_v42 = vmul.f32 %v756_v2, %v748_v34 }
 0x2b3   : > { %v745_v36 = vadd.f32 %v740_v11, %v727_v35  ;;  %v730_v19 = vpop.xlane.xlu1 %729 }
 0x2b4   : > { %v746_v38 = vadd.f32 %v740_v11, %v730_v19  ;;  %820 = sbr.rel (!%p1507_p4) target bundleno = 748 (0x2ec), region = 44 }
 0x2b5   : > { %v761_v16 = vmul.f32 %v1603_v37, %v745_v36 }
 0x2b6   : > { %v762_v40 = vmul.f32 %v1585_v20, %v746_v38  ;;  %v786_v41 = vpop.permute.xlu0 %785 }
 0x2b7   : > { %v801_v43 = vadd.f32 %v782_v10, %v761_v16  ;;  %v803_v44 = vadd.f32 %v786_v41, %v763_v39  ;;  %v788_v45 = vpop.permute.xlu1 %787 }
 0x2b8   : > { %v802_v46 = vadd.f32 %v784_v9, %v762_v40  ;;  %v804_v47 = vadd.f32 %v788_v45, %v764_v42 }
 0x2b9   : > { %810 = vst.msk [vmem:[%s1628_s30 + $0x20] sm:$0xff] %vm805_vm1, %v801_v43  ;;  %812 = vst.msk [vmem:[%s1628_s30 + $0x30] sm:$0xff] %vm805_vm1, %v803_v44 }
 0x2ba   : > { %811 = vst.msk [vmem:[%s1628_s30 + $0x28] sm:$0xff] %vm805_vm1, %v802_v46  ;;  %813 = vst.msk [vmem:[%s1628_s30 + $0x38] sm:$0xff] %vm805_vm1, %v804_v47 }
 0x2bb   : > { %s1725_s18 = smov (!%p823_p8, %s822_s18), 8 }
 0x2bc   : > { %s1116_s11 = sshll.u32 %s1725_s18, 7 }
 0x2bd   : > { %p1119_p9 = scmp.eq.s32.totalorder %s1116_s11, 0 }
 0x2be   : > { %s1663_s12 = sshrl.u32 (!%p1119_p9), %s1725_s18, 3 }
 0x2bf   : > { %831 = sbr.rel (%p1119_p9) target bundleno = 748 (0x2ec), region = 48  ;;  %p1120_p10 = scmp.le.s32.totalorder (!%p1119_p9), %s1663_s12, 0 }
 0x2c6   : > { %1019 = sbr.rel (%p1120_p10) target bundleno = 727 (0x2d7), region = 127  ;;  %s1718_s21 = smov (!%p1120_p10), %s1657_s10 }
 0x2c7   : > { %s1719_s26 = smov (!%p1120_p10), %s1628_s30  ;;  %s1672_s29 = smov (!%p1120_p10), 0  }
 0x2c8   : > { %s1674_s13 = smov (!%p1120_p10), 0  }
 0x2cd LB: >> { %v907_v20 = vld [vmem:[%s1425_s26] sm:$0xff]  ;;  %v909_v37 = vld [vmem:[%s1425_s26 + $0x8] sm:$0xff]  ;;  %v911_v48 = vld [vmem:[%s1425_s26 + $0x10] sm:$0xff]  ;;  %s923_s14 = sadd.s32 1, %s1429_s29  ;;  %s901_s13 = sadd.s32 1, %s1433_s13   ;;  %s1433_s13 = sphi %s1674_s13, %s901_s13   ;;  %s1429_s29 = sphi %s1672_s29, %s1720_s29   ;;  %s1425_s26 = sphi %s1719_s26, %s928_s26   ;;  %s1421_s21 = sphi %s1718_s21, %s929_s21  }
 0x2ce   : >> { %908 = vst [vmem:[%s1421_s21] sm:$0xff] %v907_v20  ;;  %910 = vst [vmem:[%s1421_s21 + $0x8] sm:$0xff] %v909_v37  ;;  %v913_v49 = vld [vmem:[%s1425_s26 + $0x18] sm:$0xff]  ;;  %v915_v50 = vld [vmem:[%s1425_s26 + $0x20] sm:$0xff]  ;;  %p924_p11 = scmp.ge.s32.totalorder %s923_s14, %s1663_s12  ;;  %p900_p12 = scmp.ge.s32.totalorder %s901_s13, %s1663_s12 }
 0x2cf   : >> { %912 = vst [vmem:[%s1421_s21 + $0x10] sm:$0xff] %v911_v48  ;;  %v917_v51 = vld [vmem:[%s1425_s26 + $0x28] sm:$0xff]  ;;  %914 = vst [vmem:[%s1421_s21 + $0x18] sm:$0xff] %v913_v49  ;;  %v919_v52 = vld [vmem:[%s1425_s26 + $0x30] sm:$0xff] }
 0x2d0   : >> { %916 = vst [vmem:[%s1421_s21 + $0x20] sm:$0xff] %v915_v50  ;;  %918 = vst [vmem:[%s1421_s21 + $0x28] sm:$0xff] %v917_v51  ;;  %v921_v54 = vld [vmem:[%s1425_s26 + $0x38] sm:$0xff]  ;;  %s1727_s14 = smov (%p924_p11, %s923_s14), 0  ;;  %903 = sbr.rel (!%p900_p12) target bundleno = 717 (0x2cd), region = 133 }
 0x2d1   : >> { %920 = vst [vmem:[%s1421_s21 + $0x30] sm:$0xff] %v919_v52  ;;  %922 = vst [vmem:[%s1421_s21 + $0x38] sm:$0xff] %v921_v54  ;;  %s1121_s15 = sshll.u32 %s1727_s14, 6  ;;  %s1720_s29 = smov %s1727_s14 }
 0x2d2   : >> { %s928_s26 = scalar_lea.vmem %s1628_s30, %s1121_s15 [#allocation2]   ;;  %s929_s21 = scalar_lea.vmem %s1657_s10, %s1121_s15  }
 0x2d7 PF: > { %s1693_s16 = sand.u32 7, %s1725_s18   ;;  %s1132_s17 = sshll.u32 %s1663_s12, 6 }
 0x2d8   : > { %s934_s20 = scalar_lea.vmem %s1628_s30, %s1132_s17 [#allocation2]   ;;  %s936_s23 = scalar_lea.vmem %s1657_s10, %s1132_s17  }
 0x2d9   : > { %p1126_p13 = scmp.le.s32.totalorder %s1693_s16, 0 }
 0x2da   : > { %s1435_s7 = smov (!%p1126_p13), %s936_s23   ;;  %s1439_s24 = smov (!%p1126_p13), %s934_s20  }
 0x2db   : > { %1033 = sbr.rel (%p1126_p13) target bundleno = 748 (0x2ec), region = 138  ;;  %s1443_s27 = smov (!%p1126_p13), 0  }
 0x2dc   : > { %s1447_s28 = smov (!%p1126_p13), 0  }
 0x2e2 LB: >> { %v946_v56 = vld [vmem:[%s1441_s24] sm:$0xff]  ;;  %s948_s18 = sadd.s32 1, %s1445_s27  ;;  %s940_s28 = sadd.s32 1, %s1449_s28   ;;  %s1449_s28 = sphi %s1447_s28, %s940_s28   ;;  %s1445_s27 = sphi %s1443_s27, %s1444_s27   ;;  %s1441_s24 = sphi %s1439_s24, %s953_s24   ;;  %s1437_s7 = sphi %s1435_s7, %s954_s7  }
 0x2e3   : >> { %947 = vst [vmem:[%s1437_s7] sm:$0xff] %v946_v56  ;;  %p949_p0 = scmp.ge.s32.totalorder %s948_s18, %s1693_s16  ;;  %p939_p1 = scmp.ge.s32.totalorder %s940_s28, %s1693_s16 }
 0x2e5   : >> { %s1729_s18 = smov (%p949_p0, %s948_s18), 0  ;;  %942 = sbr.rel (!%p939_p1) target bundleno = 738 (0x2e2), region = 144 }
 0x2e6   : >> { %s1127_s30 = sshll.u32 %s1729_s18, 3  ;;  %s1444_s27 = smov %s1729_s18  }
 0x2e7   : >> { %s953_s24 = scalar_lea.vmem %s934_s20, %s1127_s30 [#allocation2]   ;;  %s954_s7 = scalar_lea.vmem %s936_s23, %s1127_s30  }
 0x2ec PF: > { %p12_p2 = scmp.ge.s32.totalorder %s1497_s22, 4   ;;  %s1721_s18 = smov %s1413_s19 }
 0x2ed   : > { %s1722_s19 = smov %s1505_s25  ;;  %s1723_s20 = smov %s1497_s22 }
 0x2ee   :  { %14 = sbr.rel (!%p12_p2) target bundleno = 2 (0x2), region = 155 }

</bundles_post_ra>
